<compile_context>
chip_gen: v5e
topology: v5e:2x2
jax: 0.10.0
libtpu: 0.0.40
codegen_flags: <defaults>
</compile_context>

<pallas_src>
import jax
import jax.numpy as jnp
from jax.experimental import pallas as pl
from jax.experimental.pallas import tpu as pltpu


def zero_conv1d_kernel(x_ref, w_ref, b_ref, g_ref, o_ref):
    # x_ref: (Cin, TL)   input tile, L on the 128-lane axis (batch dim squeezed)
    # w_ref: (Cout, Cin) 1x1 conv weights
    # b_ref: (Cout, 1)   conv bias
    # g_ref: (Cout, 1)   precomputed gain exp(scale * 3)
    # o_ref: (Cout, TL)  output tile, lane-dense
    y = jnp.dot(w_ref[...], x_ref[...], preferred_element_type=jnp.float32)
    y = (y + b_ref[...]) * g_ref[...]          # f32 epilogue on the VPU
    o_ref[...] = y.astype(o_ref.dtype)


def zero_conv1d(x_ncl, weight_oik, bias, scale_param, *, tl=256):
    """x_ncl: (N, Cin, L); weight_oik: (Cout, Cin, 1); bias: (Cout,);
    scale_param: (1, Cout, 1). Returns (N, Cout, L)."""
    # TODO(synk): groups > 1 (block-diagonal 1x1 conv) not implemented; the
    # module default groups=1 is what this kernel covers.
    N, Cin, L = x_ncl.shape
    Cout = weight_oik.shape[0]

    tl = min(tl, L)                              # tile of the L axis (lane axis)
    w2d = weight_oik.reshape(Cout, Cin)          # kernel size 1 -> plain matrix
    b = bias.reshape(Cout, 1)
    # Parameter-only gain: hoisted out of the kernel entirely.
    g = jnp.exp(scale_param.reshape(Cout, 1) * 3.0)

    grid = (N, pl.cdiv(L, tl))

    out = pl.pallas_call(
        zero_conv1d_kernel,
        out_shape=jax.ShapeDtypeStruct((N, Cout, L), x_ncl.dtype),
        grid=grid,
        in_specs=[
            pl.BlockSpec((None, Cin, tl), lambda n, l: (n, 0, l)),   # batch squeezed
            pl.BlockSpec((Cout, Cin), lambda n, l: (0, 0)),
            pl.BlockSpec((Cout, 1), lambda n, l: (0, 0)),
            pl.BlockSpec((Cout, 1), lambda n, l: (0, 0)),
        ],
        out_specs=pl.BlockSpec((None, Cout, tl), lambda n, l: (n, 0, l)),
        compiler_params=pltpu.CompilerParams(
            dimension_semantics=("parallel", "parallel")),
    )(x_ncl, w2d, b, g)

    return out


def reference_zero_conv1d(x_ncl, weight_oik, bias, scale_param):
    """Pure-JAX reference matching the PyTorch forward exactly."""
    y = jax.lax.conv_general_dilated(
        x_ncl, weight_oik, window_strides=(1,), padding="VALID",
        dimension_numbers=("NCH", "OIH", "NCH"))
    y = y + bias.reshape(1, -1, 1)
    y = y * jnp.exp(scale_param * 3.0)
    return y


if __name__ == "__main__":
    key = jax.random.PRNGKey(0)
    k_x, k_w, k_b, k_s = jax.random.split(key, 4)

    N, Cin, L = 2, 4, 512
    Cout = 8

    x = jax.random.normal(k_x, (N, Cin, L), dtype=jnp.float32)

    # The PyTorch module zero-inits weight/bias/scale (trivially handled here).
    # Use small deterministic non-zero values so the conv + exp-scale hot path
    # is actually exercised and verifiable.
    weight = 0.1 * jax.random.normal(k_w, (Cout, Cin, 1), dtype=jnp.float32)
    bias = 0.1 * jax.random.normal(k_b, (Cout,), dtype=jnp.float32)
    scale = 0.1 * jax.random.normal(k_s, (1, Cout, 1), dtype=jnp.float32)

    out = zero_conv1d(x, weight, bias, scale)
    out = jax.block_until_ready(out)

    ref = reference_zero_conv1d(x, weight, bias, scale)
    assert out.shape == (N, Cout, L)
    assert jnp.allclose(out, ref, atol=1e-5, rtol=1e-5), "mismatch vs reference"

    print("KERNEL_OK")
</pallas_src>

<mosaic_0001>
module attributes {stable_mosaic.version = 11 : i64} {
  func.func @zero_conv1d_kernel(%arg0: i32, %arg1: i32, %arg2: memref<1x4x256xf32, #tpu.memory_space<vmem>>, %arg3: memref<8x4xf32, #tpu.memory_space<vmem>>, %arg4: memref<8x1xf32, #tpu.memory_space<vmem>>, %arg5: memref<8x1xf32, #tpu.memory_space<vmem>>, %arg6: memref<1x8x256xf32, #tpu.memory_space<vmem>>) attributes {dimension_semantics = [#tpu.dimension_semantics<parallel>, #tpu.dimension_semantics<parallel>], iteration_bounds = array<i64: 2, 2>, scalar_prefetch = 0 : i64, scratch_operands = 0 : i64, tpu.core_type = #tpu.core_type<tc>, window_params = [{transform_indices = @transform_0, window_bounds = array<i64: 1, 4, 256>}, {pipeline_mode = #tpu.pipeline_mode<synchronous>, transform_indices = @transform_1, window_bounds = array<i64: 8, 4>}, {pipeline_mode = #tpu.pipeline_mode<synchronous>, transform_indices = @transform_2, window_bounds = array<i64: 8, 1>}, {pipeline_mode = #tpu.pipeline_mode<synchronous>, transform_indices = @transform_3, window_bounds = array<i64: 8, 1>}, {transform_indices = @transform_4, window_bounds = array<i64: 1, 8, 256>}]} {
    %c0 = arith.constant 0 : index
    %c0_0 = arith.constant 0 : index
    %0 = vector.load %arg3[%c0, %c0_0] : memref<8x4xf32, #tpu.memory_space<vmem>>, vector<8x4xf32>
    %c0_1 = arith.constant 0 : index
    %c0_2 = arith.constant 0 : index
    %c0_3 = arith.constant 0 : index
    %1 = vector.load %arg2[%c0_1, %c0_2, %c0_3] : memref<1x4x256xf32, #tpu.memory_space<vmem>>, vector<1x4x256xf32>
    %2 = vector.shape_cast %1 : vector<1x4x256xf32> to vector<4x256xf32>
    %cst = arith.constant dense<0.000000e+00> : vector<8x256xf32>
    %3 = tpu.matmul %0, %2, %cst {dimension_numbers = #tpu.dot_dimension_numbers<[1], [0], [0], [1], [0, 0, 1, 1], [], []>} : vector<8x4xf32>, vector<4x256xf32>, vector<8x256xf32> -> vector<8x256xf32>
    %c0_4 = arith.constant 0 : index
    %c0_5 = arith.constant 0 : index
    %4 = vector.load %arg4[%c0_4, %c0_5] : memref<8x1xf32, #tpu.memory_space<vmem>>, vector<8x1xf32>
    %5 = vector.broadcast %4 : vector<8x1xf32> to vector<8x256xf32>
    %6 = arith.addf %3, %5 : vector<8x256xf32>
    %c0_6 = arith.constant 0 : index
    %c0_7 = arith.constant 0 : index
    %7 = vector.load %arg5[%c0_6, %c0_7] : memref<8x1xf32, #tpu.memory_space<vmem>>, vector<8x1xf32>
    %8 = vector.broadcast %7 : vector<8x1xf32> to vector<8x256xf32>
    %9 = arith.mulf %6, %8 : vector<8x256xf32>
    %c0_8 = arith.constant 0 : index
    %c0_9 = arith.constant 0 : index
    %c0_10 = arith.constant 0 : index
    %10 = vector.load %arg6[%c0_8, %c0_9, %c0_10] : memref<1x8x256xf32, #tpu.memory_space<vmem>>, vector<1x8x256xf32>
    %11 = vector.shape_cast %10 : vector<1x8x256xf32> to vector<8x256xf32>
    %12 = vector.shape_cast %9 : vector<8x256xf32> to vector<1x8x256xf32>
    tpu.vector_store %arg6[%c0_8, %c0_9, %c0_10], %12 {strides = array<i32>} : memref<1x8x256xf32, #tpu.memory_space<vmem>>, vector<1x8x256xf32>,
    return
  }
  func.func @transform_0(%arg0: i32, %arg1: i32) -> (i32, i32, i32) {
    %c0_i32 = arith.constant 0 : i32
    %c0_i32_0 = arith.constant 0 : i32
    return %arg0, %c0_i32, %arg1 : i32, i32, i32
  }
  func.func @transform_1(%arg0: i32, %arg1: i32) -> (i32, i32) {
    %c0_i32 = arith.constant 0 : i32
    %c0_i32_0 = arith.constant 0 : i32
    %c0_i32_1 = arith.constant 0 : i32
    return %c0_i32, %c0_i32_0 : i32, i32
  }
  func.func @transform_2(%arg0: i32, %arg1: i32) -> (i32, i32) {
    %c0_i32 = arith.constant 0 : i32
    %c0_i32_0 = arith.constant 0 : i32
    %c0_i32_1 = arith.constant 0 : i32
    return %c0_i32, %c0_i32_0 : i32, i32
  }
  func.func @transform_3(%arg0: i32, %arg1: i32) -> (i32, i32) {
    %c0_i32 = arith.constant 0 : i32
    %c0_i32_0 = arith.constant 0 : i32
    %c0_i32_1 = arith.constant 0 : i32
    return %c0_i32, %c0_i32_0 : i32, i32
  }
  func.func @transform_4(%arg0: i32, %arg1: i32) -> (i32, i32, i32) {
    %c0_i32 = arith.constant 0 : i32
    %c0_i32_0 = arith.constant 0 : i32
    return %arg0, %c0_i32, %arg1 : i32, i32, i32
  }
}

</mosaic_0001>

<bundles_post_ra>
// kernel: tpu_custom_call.1
= control target key start
LH: loop header
LB: loop body
LE: loop exit
PB: predicated region body
PF: predicated region fallthrough
CT: control target
= control target key end

     0   :  { %9 = vsyncpa [#allocation3], 0  ;;  %s822_s0 = inlined_call_operand.hbm [shape: f32[2,4,512], index: 0, kind: input, shape index: {}]   ;;  %s823_s1 = inlined_call_operand.vmem [shape: f32[8,4], index: 1, kind: input, shape index: {}]   ;;  %s824_s2 = inlined_call_operand.vmem [shape: f32[8,1], index: 2, kind: input, shape index: {}]   ;;  %s825_s3 = inlined_call_operand.vmem [shape: f32[8,1], index: 3, kind: input, shape index: {}]   ;;  %s826_s4 = inlined_call_operand.hbm [shape: f32[2,8,512], index: 4, kind: output, shape index: {}]  }
   0x1   :  { %11 = vsyncpa [#allocation3 + $0x1], 0 }
   0x2   :  { %12 = vsyncpa [#allocation4], 0 }
   0x3   :  { %14 = vsyncpa [#allocation4 + $0x1], 0  ;;  %s670_s15 = smov 0   ;;  %s672_s16 = smov 0  }
   0x4   :  { %s674_s17 = smov 0   ;;  %s676_s18 = smov 0  }
   0x5   :  { %s678_s19 = smov 0   ;;  %s680_s20 = smov 0  }
   0x6   :  { %s682_s21 = smov 0   ;;  %s684_s22 = smov 0  }
   0x7 LB: > { %s413_s23 = sadd.s32 4294967295, %s642_s22   ;;  %s414_s24 = sadd.s32 4294967294, %s642_s22   ;;  %s642_s22 = sphi %s684_s22, %s20_s22   ;;  %s638_s21 = sphi %s682_s21, %s843_s21   ;;  %s634_s20 = sphi %s680_s20, %s842_s20   ;;  %s630_s19 = sphi %s678_s19, %s841_s19   ;;  %s626_s18 = sphi %s676_s18, %s840_s18   ;;  %s622_s17 = sphi %s674_s17, %s839_s17   ;;  %s618_s16 = sphi %s672_s16, %s838_s16   ;;  %s614_s15 = sphi %s670_s15, %s837_s15  }
   0x8   : > { %s29_s25 = sadd.s32 1, %s634_s20  ;;  %s32_s26 = sadd.s32 1, %s638_s21 }
   0x9   : > { %p30_p0 = scmp.ge.s32.totalorder %s29_s25, 2  ;;  %s41_s27 = sadd.s32 1, %s622_s17 }
   0xa   : > { %p48_p1 = scmp.ne.s32.totalorder %s622_s17, %s618_s16  ;;  %p49_p2 = scmp.eq.s32.totalorder %s642_s22, 0 }
   0xb   : > { %s845_s25 = smov (%p30_p0, %s29_s25), 0  ;;  %s847_s26 = smov (!%p30_p0, %s32_s26), %s638_s21 }
   0xc   : > { %829 = sst [smem:[#allocation8_spill]] %s845_s25  ;;  %s37_s28 = ssub.s32 %s634_s20, %s845_s25 }
   0xd   : > { %p723_p3 = por %p49_p2, %p48_p1  ;;  %p34_p4 = scmp.ge.s32.totalorder %s847_s26, 2 }
   0xe   : > { %p54_p5 = scmp.ne.s32.totalorder %s618_s16, %s614_s15  ;;  %p55_p6 = scmp.eq.s32.totalorder %s413_s23, 0 }
   0xf   : > { %p143_p7 = scmp.eq.s32.totalorder %s413_s23, 3  ;;  %s849_s26 = smov (%p34_p4, %s847_s26), 0 }
  0x10   : > { %831 = sst [smem:[#allocation9_spill]] %s849_s26  ;;  %p731_p8 = por %p55_p6, %p54_p5 }
  0x11   : > { %p735_p9 = por %p143_p7, %p48_p1  ;;  %s36_s6 = ssub.s32 %s638_s21, %s849_s26 }
  0x12   : > { %p149_p10 = scmp.eq.s32.totalorder %s414_s24, 3  ;;  %s38_s7 = sor.u32 %s37_s28, %s36_s6 }
  0x13   : > { %p39_p11 = scmp.eq.s32.totalorder %s38_s7, 0  ;;  %p446_p13 = scmp.lt.s32.totalorder %s642_s22, 4 }
  0x14   : > { %p741_p12 = por %p149_p10, %p54_p5  ;;  %s178_s9 = sand.u32 1, %s622_s17  }
  0x15   : > { %s748_s10 = scalar_select %p39_p11, %s622_s17, %s41_s27  }
  0x16   : > { %s417_s11 = sshll.u32 %s178_s9, 3  ;;  %s418_s12 = sshll.u32 %s634_s20, 1 }
  0x17   : > { %s419_s13 = sshll.u32 %s638_s21, 2  ;;  %s182_s14 = scalar_lea.vmem [#allocation2], %s417_s11 }
  0x18   : > { %s193_s23 = sshll.u32 %s182_s14, 4  ;;  %s187_s26 = sadd.s32 %s419_s13, %s418_s12  ;;  %s194_s23 = int_to_ptr.vmem [resolvable:$true] %s193_s23 }
  0x19   : > { %s420_s24 = sshll.u32 %s187_s26, 2  ;;  %p439_p0 = pnand %p446_p13, %p723_p3 }
  0x1a   : > { %s189_s7 = scalar_lea.hbm %s822_s0, %s420_s24  ;;  %p421_p1 = scmp.ge.s32.totalorder %s642_s22, 1 }
  0x1b   : > { %s191_s25 = sshll.u32 %s189_s7, 4  ;;  %p198_p2 = scmp.lt.s32.totalorder %s642_s22, 5  ;;  %s192_s25 = int_to_ptr.hbm [resolvable:$true] %s191_s25 }
  0x1c   : > { %s179_s27 = scalar_lea.sflag [#allocation3], %s178_s9 }
  0x1d   : > { %441 = dma.hbm_to_vmem [thread:$0]  (!%p439_p0), %s192_s25, 128, %s194_s23, %s179_s27  }
  0x1e   : > { %p199_p4 = pnand %p421_p1, %p198_p2 }
  0x1f   : > { %s760_s11 = sand.u32 (!%p199_p4), 1, %s618_s16  }
  0x20   : > { %202 = sbr.rel (%p199_p4) target bundleno = 182 (0xb6), region = 36  ;;  %s422_s26 = sshll.u32 (!%p199_p4), %s760_s11, 3 }
  0x21   : > { %s205_s29 = scalar_lea.sflag (!%p199_p4), [#allocation3], %s760_s11  ;;  %s208_s12 = scalar_lea.vmem (!%p199_p4), [#allocation2], %s422_s26 }
  0x25   : > { %605 = dma.done.wait (%p731_p8), %s205_s29, 128  }
  0x26   : > { %607 = vsyncadd (%p731_p8), %s205_s29, 4294967168  ;;  %v644_v0 = vmov 0   ;;  %v237_v1 = vld [vmem:[%s208_s12] sm:$0xff]  ;;  %v238_v2 = vld [vmem:[%s824_s2] sm:$0xff]  ;;  %vm252_vm0 = vcmask 1043456   ;;  %vm248_vm1 = vcmask 31744  }
  0x27   : > { %513 = vset.pattern.permute.xlu0 %v644_v0  ;;  %245 = vst [vmem:[#allocation1] ss:$2 sm:$0xff] %v237_v1  ;;  %v236_v3 = vld [vmem:[%s823_s1] sm:$0xff]  ;;  %s429_s24 = sshll.u32 %s626_s18, 1  ;;  %s430_s28 = sshll.u32 %s630_s19, 2 }
  0x28   : > { %241 = vperm.xlu0 %513, %v238_v2   ;;  %v297_v4 = vld [vmem:[%s825_s3] sm:$0xff]  ;;  %s319_s6 = sadd.s32 %s430_s28, %s429_s24  ;;  %s423_s7 = sshll.u32 %s760_s11, 4 }
  0x29   : > { %s431_s27 = sshll.u32 %s319_s6, 3  ;;  %s233_s25 = scalar_lea.vmem [#allocation5], %s423_s7 }
  0x2a   : > { %s321_s12 = scalar_lea.hbm %s826_s4, %s431_s27  ;;  %s323_s9 = sshll.u32 %s233_s25, 4  ;;  %s324_s9 = int_to_ptr.vmem [resolvable:$true] %s323_s9 }
  0x2b   : > { %s325_s13 = sshll.u32 %s321_s12, 4  ;;  %s308_s18 = scalar_lea.sflag [#allocation4], %s760_s11  ;;  %s326_s13 = int_to_ptr.hbm [resolvable:$true] %s325_s13 }
  0x2c   : > { %s558_s19 = sshra.s32 %s326_s13, 4  ;;  %s564_s24 = scalar_lea.hbm %s826_s4, 64  ;;  %s559_s19 = int_to_ptr.hbm [resolvable:$true] %s558_s19 }
  0x2d   : > { %s560_s14 = scalar_lea.hbm %s559_s19, 16  ;;  %p565_p7 = scmp.lt.s32.totalorder %s559_s19, %s826_s4 }
  0x2e   : > { %v246_v5 = vld.sshfl [vmem:[#allocation1] sm:$0xff pattern:$0x75316420]  ;;  %v247_v6 = vld.sshfl [vmem:[#allocation1 + $0x8] sm:$0xff pattern:$0x75316420]  ;;  %p561_p3 = scmp.ne.s32.totalorder %s559_s19, %s560_s14  ;;  %p566_p8 = scmp.lt.s32.totalorder %s564_s24, %s560_s14 }
  0x2f   : > { %424 = vmatpush.msk.msra.mxu0 %vm252_vm0, %v246_v5  ;;  %426 = vmatpush.msk.msra.mxu1 %vm252_vm0, %v247_v6 }
  0x30   : > { %425 = vmatmul.msk.f32.vlgmr.msra.gmra.mxu0 %vm248_vm1, %v236_v3  ;;  %427 = vmatmul.msk.f32.vlgmr.msra.gmra.mxu1 %vm248_vm1, %v236_v3  ;;  %p562_p5 = pnand %p561_p3, %p735_p9  ;;  %p567_p10 = por %p566_p8, %p565_p7 }
  0x31   : > { %300 = vperm.xlu0 %513, %v297_v4  }
  0x32   : > { %p563_p6 = pneg %p562_p5 }
  0x34   : > { %p568_p11 = pnand %p567_p10, %p563_p6 }
  0x9a   : > { %v242_v7 = vpop.permute.xlu0 %241 }
  0xa3   : > { %v301_v12 = vpop.permute.xlu0 %300 }
  0xad   : > { %v274_v8 = vpop.f32.mrf.mxu0  ;;  %v294_v9 = vpop.f32.mrf.mxu1 }
  0xae   : > { %v275_v10 = vadd.f32 %v274_v8, %v242_v7  ;;  %v295_v11 = vadd.f32 %v294_v9, %v242_v7 }
  0xb0   : > { %v303_v13 = vmul.f32 %v301_v12, %v275_v10  ;;  %v304_v14 = vmul.f32 %v301_v12, %v295_v11 }
  0xb2   : > { %305 = vst [vmem:[%s233_s25] sm:$0xff] %v303_v13 }
  0xb3   : > { %306 = vst [vmem:[%s233_s25 + $0x8] sm:$0xff] %v304_v14 }
  0xb4   : > { %571 = shalt.err (!%p568_p11)
}
  0xb5   : > { %436 = dma.vmem_to_hbm [thread:$0]  (%p735_p9), %s324_s9, 256, %s326_s13, %s308_s18  }
  0xb6 PF: > { %p447_p13 = scmp.ge.s32.totalorder %s642_s22, 2  ;;  %s337_s11 = sand.u32 1, %s614_s15  }
  0xb7   : > { %s338_s7 = scalar_lea.sflag [#allocation4], %s337_s11 }
  0xb8   : > { %p443_p0 = pnand %p447_p13, %p741_p12 }
  0xba   : > { %p444_p1 = pneg %p443_p0 }
  0xbc   : > { %609 = dma.done.wait (%p444_p1), %s338_s7, 256  }
  0xbd   : > { %611 = vsyncadd (%p444_p1), %s338_s7, 4294967040  ;;  %s20_s22 = sadd.s32 1, %s642_s22   ;;  %s835_s5 = sld [smem:[#allocation8_spill]] }
  0xbe   : > { %p17_p2 = scmp.ge.s32.totalorder %s20_s22, 6   ;;  %s836_s27 = sld [smem:[#allocation9_spill]] }
  0xbf   : > { %s837_s15 = smov %s618_s16  ;;  %s838_s16 = smov %s622_s17 }
  0xc0   : > { %s839_s17 = smov %s748_s10  ;;  %s840_s18 = smov %s634_s20 }
  0xc1   : > { %s841_s19 = smov %s638_s21  ;;  %19 = sbr.rel (!%p17_p2) target bundleno = 7 (0x7), region = 81 }
  0xc3   : > { %s842_s20 = smov %s835_s5 }
  0xc4   : > { %s843_s21 = smov %s836_s27 }
  0xc6   :  { %344 = vsyncpa [#allocation3], 1 }
  0xc7   :  { %346 = vsyncpa [#allocation3 + $0x1], 1 }
  0xc8   :  { %347 = vsyncpa [#allocation4], 1 }
  0xc9   :  { %349 = vsyncpa [#allocation4 + $0x1], 1 }

</bundles_post_ra>
